<compile_context>
chip_gen: v5e
topology: v5e:2x2
jax: 0.10.0
libtpu: 0.0.40
codegen_flags: <defaults>
</compile_context>

<pallas_src>
import functools

import jax
import jax.numpy as jnp
from jax import lax
from jax.experimental import pallas as pl
from jax.experimental.pallas import tpu as pltpu


def _layer_norm_kernel(x_ref, g_ref, b_ref, o_ref, *, eps, d_model):
    x = x_ref[...].astype(jnp.float32)                     # (TR, D)
    inv_d = jnp.float32(1.0 / d_model)

    # One-pass statistics: single reduction pass over the (TR, D) tile.
    s = jnp.sum(x, axis=-1, keepdims=True)                 # (TR, 1)
    sq = jnp.sum(x * x, axis=-1, keepdims=True)            # (TR, 1)
    mean = s * inv_d
    var = jnp.maximum(sq * inv_d - mean * mean, 0.0)       # guard tiny negatives
    std = jnp.sqrt(var)

    # PyTorch quirk preserved: multiply by 1/sqrt(std + eps), std = sqrt(var).
    inv = lax.rsqrt(std + jnp.float32(eps))                # (TR, 1), EUP op

    out = (x - mean) * inv
    out = g_ref[...].astype(jnp.float32) * out + b_ref[...].astype(jnp.float32)
    o_ref[...] = out.astype(o_ref.dtype)


def _pick_tile_rows(rows, d_model, itemsize):
    # Sublane packing: f32 -> 8, bf16 -> 16, int8/fp8 -> 32.
    pack = max(8, 32 // max(1, itemsize))
    # Target ~4 MiB of x per block; with double-buffered input + output blocks
    # plus the in-kernel f32 temporaries this stays well under the VMEM budget
    # requested below (safe on v7x's 64 MiB VMEM as well as v5e/v6e).
    target_bytes = 4 << 20
    tr = max(pack, (target_bytes // max(1, d_model * itemsize)) // pack * pack)
    # Keep at least 2 grid steps when the input allows it (megacore sharding).
    half = -(-rows // 2)                       # cdiv(rows, 2)
    half = -(-half // pack) * pack             # round up to packing
    tr = min(tr, max(pack, half))
    tr = min(tr, 4096)
    return tr


def layer_norm_pallas(x, gamma, beta, eps=1e-6, *, tile_rows=None):
    """x: (..., d_model); gamma, beta: (d_model,)."""
    orig_shape = x.shape
    d_model = orig_shape[-1]
    x2 = x.reshape(-1, d_model)
    rows = x2.shape[0]

    itemsize = jnp.dtype(x.dtype).itemsize
    if tile_rows is None:
        tile_rows = _pick_tile_rows(rows, d_model, itemsize)

    gamma2 = gamma.reshape(1, d_model)
    beta2 = beta.reshape(1, d_model)

    grid = (pl.cdiv(rows, tile_rows),)

    out = pl.pallas_call(
        functools.partial(_layer_norm_kernel, eps=eps, d_model=d_model),
        out_shape=jax.ShapeDtypeStruct((rows, d_model), x.dtype),
        grid_spec=pltpu.PrefetchScalarGridSpec(
            num_scalar_prefetch=0,
            grid=grid,
            in_specs=[
                pl.BlockSpec((tile_rows, d_model), lambda i: (i, 0)),
                pl.BlockSpec((1, d_model), lambda i: (0, 0)),  # gamma resident
                pl.BlockSpec((1, d_model), lambda i: (0, 0)),  # beta resident
            ],
            out_specs=pl.BlockSpec((tile_rows, d_model), lambda i: (i, 0)),
        ),
        compiler_params=pltpu.CompilerParams(
            dimension_semantics=("parallel",),
            vmem_limit_bytes=48 << 20,
        ),
    )(x2, gamma2, beta2)

    return out.reshape(orig_shape)


def _reference(x, gamma, beta, eps):
    mean = jnp.mean(x, axis=-1, keepdims=True)
    std = jnp.sqrt(jnp.mean((x - mean) ** 2, axis=-1, keepdims=True))
    return gamma * ((x - mean) / jnp.sqrt(std + eps)) + beta


if __name__ == "__main__":
    key = jax.random.PRNGKey(0)

    # Small transformer-shaped input: (batch, seq, d_model).
    batch, seq, d_model = 2, 8, 32
    x = jax.random.normal(key, (batch, seq, d_model), dtype=jnp.float32)
    gamma = jnp.ones((d_model,), dtype=jnp.float32)
    beta = jnp.zeros((d_model,), dtype=jnp.float32)

    out = layer_norm_pallas(x, gamma, beta, eps=1e-6)
    out = jax.block_until_ready(out)
    ref = _reference(x, gamma, beta, 1e-6)
    assert jnp.allclose(out, ref, atol=2e-5, rtol=1e-5), "mismatch vs reference"

    # Second case: row count NOT divisible by the tile -> exercises the masked
    # partial last block (no jnp.pad / slice in the wrapper).
    key2 = jax.random.PRNGKey(1)
    x2 = jax.random.normal(key2, (3, 7, d_model), dtype=jnp.float32)
    out2 = jax.block_until_ready(layer_norm_pallas(x2, gamma, beta, eps=1e-6))
    ref2 = _reference(x2, gamma, beta, 1e-6)
    assert jnp.allclose(out2, ref2, atol=2e-5, rtol=1e-5), "mismatch (partial block)"

    print("KERNEL_OK")
</pallas_src>

<mosaic_0001>
module attributes {stable_mosaic.version = 11 : i64} {
  func.func @_layer_norm_kernel(%arg0: i32, %arg1: memref<8x32xf32, #tpu.memory_space<vmem>>, %arg2: memref<1x32xf32, #tpu.memory_space<vmem>>, %arg3: memref<1x32xf32, #tpu.memory_space<vmem>>, %arg4: memref<8x32xf32, #tpu.memory_space<vmem>>) attributes {dimension_semantics = [#tpu.dimension_semantics<parallel>], iteration_bounds = array<i64: 2>, scalar_prefetch = 0 : i64, scratch_operands = 0 : i64, tpu.core_type = #tpu.core_type<tc>, window_params = [{transform_indices = @transform_0, window_bounds = array<i64: 8, 32>}, {pipeline_mode = #tpu.pipeline_mode<synchronous>, transform_indices = @transform_1, window_bounds = array<i64: 1, 32>}, {pipeline_mode = #tpu.pipeline_mode<synchronous>, transform_indices = @transform_2, window_bounds = array<i64: 1, 32>}, {transform_indices = @transform_3, window_bounds = array<i64: 8, 32>}]} {
    %c0 = arith.constant 0 : index
    %c0_0 = arith.constant 0 : index
    %0 = vector.load %arg1[%c0, %c0_0] : memref<8x32xf32, #tpu.memory_space<vmem>>, vector<8x32xf32>
    %cst = arith.constant dense<0.000000e+00> : vector<8xf32>
    %1 = vector.multi_reduction <add>, %0, %cst [1] : vector<8x32xf32> to vector<8xf32>
    %2 = vector.shape_cast %1 : vector<8xf32> to vector<8x1xf32>
    %3 = arith.mulf %0, %0 : vector<8x32xf32>
    %cst_1 = arith.constant dense<0.000000e+00> : vector<8xf32>
    %4 = vector.multi_reduction <add>, %3, %cst_1 [1] : vector<8x32xf32> to vector<8xf32>
    %5 = vector.shape_cast %4 : vector<8xf32> to vector<8x1xf32>
    %cst_2 = arith.constant 3.125000e-02 : f32
    %6 = vector.broadcast %cst_2 : f32 to vector<8x1xf32>
    %7 = arith.mulf %2, %6 : vector<8x1xf32>
    %cst_3 = arith.constant 3.125000e-02 : f32
    %8 = vector.broadcast %cst_3 : f32 to vector<8x1xf32>
    %9 = arith.mulf %5, %8 : vector<8x1xf32>
    %10 = arith.mulf %7, %7 : vector<8x1xf32>
    %11 = arith.subf %9, %10 : vector<8x1xf32>
    %cst_4 = arith.constant 0.000000e+00 : f32
    %12 = vector.broadcast %cst_4 : f32 to vector<8x1xf32>
    %13 = arith.maximumf %11, %12 : vector<8x1xf32>
    %14 = math.sqrt %13 : vector<8x1xf32>
    %cst_5 = arith.constant 9.99999997E-7 : f32
    %15 = vector.broadcast %cst_5 : f32 to vector<8x1xf32>
    %16 = arith.addf %14, %15 : vector<8x1xf32>
    %17 = math.rsqrt %16 : vector<8x1xf32>
    %18 = vector.broadcast %7 : vector<8x1xf32> to vector<8x32xf32>
    %19 = arith.subf %0, %18 : vector<8x32xf32>
    %20 = vector.broadcast %17 : vector<8x1xf32> to vector<8x32xf32>
    %21 = arith.mulf %19, %20 : vector<8x32xf32>
    %c0_6 = arith.constant 0 : index
    %c0_7 = arith.constant 0 : index
    %22 = vector.load %arg2[%c0_6, %c0_7] : memref<1x32xf32, #tpu.memory_space<vmem>>, vector<1x32xf32>
    %23 = vector.broadcast %22 : vector<1x32xf32> to vector<8x32xf32>
    %24 = arith.mulf %23, %21 : vector<8x32xf32>
    %c0_8 = arith.constant 0 : index
    %c0_9 = arith.constant 0 : index
    %25 = vector.load %arg3[%c0_8, %c0_9] : memref<1x32xf32, #tpu.memory_space<vmem>>, vector<1x32xf32>
    %26 = vector.broadcast %25 : vector<1x32xf32> to vector<8x32xf32>
    %27 = arith.addf %24, %26 : vector<8x32xf32>
    %c0_10 = arith.constant 0 : index
    %c0_11 = arith.constant 0 : index
    %28 = vector.load %arg4[%c0_10, %c0_11] : memref<8x32xf32, #tpu.memory_space<vmem>>, vector<8x32xf32>
    tpu.vector_store %arg4[%c0_10, %c0_11], %27 {strides = array<i32>} : memref<8x32xf32, #tpu.memory_space<vmem>>, vector<8x32xf32>,
    return
  }
  func.func @transform_0(%arg0: i32) -> (i32, i32) {
    %c0_i32 = arith.constant 0 : i32
    %c0_i32_0 = arith.constant 0 : i32
    return %arg0, %c0_i32 : i32, i32
  }
  func.func @transform_1(%arg0: i32) -> (i32, i32) {
    %c0_i32 = arith.constant 0 : i32
    %c0_i32_0 = arith.constant 0 : i32
    %c0_i32_1 = arith.constant 0 : i32
    return %c0_i32, %c0_i32_0 : i32, i32
  }
  func.func @transform_2(%arg0: i32) -> (i32, i32) {
    %c0_i32 = arith.constant 0 : i32
    %c0_i32_0 = arith.constant 0 : i32
    %c0_i32_1 = arith.constant 0 : i32
    return %c0_i32, %c0_i32_0 : i32, i32
  }
  func.func @transform_3(%arg0: i32) -> (i32, i32) {
    %c0_i32 = arith.constant 0 : i32
    %c0_i32_0 = arith.constant 0 : i32
    return %arg0, %c0_i32 : i32, i32
  }
}

</mosaic_0001>

<bundles_post_ra>
// kernel: tpu_custom_call.1
= control target key start
LH: loop header
LB: loop body
LE: loop exit
PB: predicated region body
PF: predicated region fallthrough
CT: control target
= control target key end

     0   :  { %8 = vsyncpa [#allocation3], 0  ;;  %s727_s0 = inlined_call_operand.hbm [shape: f32[16,32], index: 0, kind: input, shape index: {}]   ;;  %s728_s1 = inlined_call_operand.hbm [shape: f32[1,32], index: 1, kind: input, shape index: {}]   ;;  %s729_s2 = inlined_call_operand.vmem [shape: f32[1,32], index: 2, kind: input, shape index: {}]   ;;  %s730_s3 = inlined_call_operand.hbm [shape: f32[16,32], index: 3, kind: output, shape index: {}]  }
   0x1   :  { %10 = vsyncpa [#allocation3 + $0x1], 0 }
   0x2   :  { %11 = vsyncpa [#allocation6], 0 }
   0x3   :  { %12 = vsyncpa [#allocation4], 0 }
   0x4   :  { %14 = vsyncpa [#allocation4 + $0x1], 0  ;;  %s579_s12 = smov 0   ;;  %s581_s13 = smov 0  }
   0x5   :  { %s583_s14 = smov 0   ;;  %s585_s15 = smov 0  }
   0x6 LB: > { %s600_s16 = sadd.s32 4294967295, %s556_s15   ;;  %s349_s17 = sadd.s32 4294967294, %s556_s15   ;;  %s556_s15 = sphi %s585_s15, %s740_s15   ;;  %s552_s14 = sphi %s583_s14, %s739_s14   ;;  %s548_s13 = sphi %s581_s13, %s738_s13   ;;  %s544_s12 = sphi %s579_s12, %s737_s12  }
   0x7   : > { %p40_p0 = scmp.ne.s32.totalorder %s548_s13, %s544_s12  ;;  %p41_p1 = scmp.eq.s32.totalorder %s600_s16, 0 }
   0x8   : > { %p106_p2 = scmp.eq.s32.totalorder %s600_s16, 1  ;;  %p112_p3 = scmp.eq.s32.totalorder %s349_s17, 1 }
   0x9   : > { %p609_p4 = por %p41_p1, %p40_p0  ;;  %p350_p5 = scmp.ge.s32.totalorder %s556_s15, 1 }
   0xa   : > { %p614_p6 = por %p112_p3, %p40_p0  ;;  %p119_p7 = scmp.lt.s32.totalorder %s556_s15, 3 }
   0xb   : > { %s131_s22 = sshll.u32 %s728_s1, 4  ;;  %s558_s24 = smov [#allocation5]   ;;  %s132_s22 = int_to_ptr.hbm [resolvable:$true] %s131_s22 }
   0xc   : > { %p622_p8 = pnand %p350_p5, %p119_p7  ;;  %s133_s25 = sshll.u32 %s558_s24, 4  ;;  %s134_s25 = int_to_ptr.vmem [resolvable:$true] %s133_s25 }
   0xd   : > { %s632_s26 = sadd.s32 1, %s556_s15   ;;  %s27_s27 = sadd.s32 1, %s552_s14 }
   0xe   : > { %p371_p10 = pneg %p622_p8  ;;  %s24_s28 = ssub.s32 %s556_s15, %s632_s26 }
   0xf   : > { %p25_p12 = scmp.eq.s32.totalorder %s24_s28, 0  ;;  %p34_p13 = scmp.ne.s32.totalorder %s552_s14, %s548_s13 }
  0x10   : > { %p372_p11 = pnand %p371_p10, %p41_p1  ;;  %p35_p0 = scmp.eq.s32.totalorder %s556_s15, 0 }
  0x11   : > { %s641_s29 = scalar_select %p25_p12, %s552_s14, %s27_s27  }
  0x12   : > { %374 = dma.hbm_to_vmem [thread:$0]  (!%p372_p11), %s132_s22, 16, %s134_s25, [#allocation6]  }
  0x13   : > { %p645_p3 = por %p106_p2, %p34_p13  ;;  %p384_p5 = scmp.lt.s32.totalorder %s556_s15, 2 }
  0x14   : > { %s147_s4 = sand.u32 1, %s552_s14   ;;  %s354_s5 = sshll.u32 %s556_s15, 3 }
  0x15   : > { %p36_p7 = por %p35_p0, %p34_p13  ;;  %s353_s6 = sshll.u32 %s147_s4, 3 }
  0x16   : > { %s155_s9 = scalar_lea.hbm %s727_s0, %s354_s5  ;;  %s151_s11 = scalar_lea.vmem [#allocation2], %s353_s6 }
  0x17   : > { %s157_s10 = sshll.u32 %s155_s9, 4  ;;  %s159_s17 = sshll.u32 %s151_s11, 4  ;;  %s158_s10 = int_to_ptr.hbm [resolvable:$true] %s157_s10  ;;  %s160_s17 = int_to_ptr.vmem [resolvable:$true] %s159_s17 }
  0x18   : > { %p655_p10 = pnand %p384_p5, %p36_p7  ;;  %s148_s21 = scalar_lea.sflag [#allocation3], %s147_s4 }
  0x19   : > { %s456_s22 = sshra.s32 %s158_s10, 4  ;;  %s463_s28 = scalar_lea.hbm %s727_s0, 16  ;;  %s457_s22 = int_to_ptr.hbm [resolvable:$true] %s456_s22 }
  0x1a   : > { %s458_s24 = scalar_lea.hbm %s457_s22, 8  ;;  %p460_p11 = pneg %p655_p10 }
  0x1b   : > { %p459_p2 = scmp.ne.s32.totalorder %s457_s22, %s458_s24  ;;  %p464_p0 = scmp.lt.s32.totalorder %s457_s22, %s727_s0 }
  0x1c   : > { %p465_p5 = scmp.lt.s32.totalorder %s463_s28, %s458_s24 }
  0x1d   : > { %p461_p12 = pnand %p460_p11, %p459_p2 }
  0x1e   : > { %p466_p7 = por %p465_p5, %p464_p0 }
  0x1f   : > { %p462_p13 = pneg %p461_p12 }
  0x21   : > { %p467_p9 = pnand %p466_p7, %p462_p13 }
  0x23   : > { %470 = shalt.err (!%p467_p9)
}
  0x24   : > { %378 = dma.hbm_to_vmem [thread:$0]  (!%p655_p10), %s158_s10, 128, %s160_s17, %s148_s21  }
  0x25   : > { %168 = sbr.rel (%p622_p8) target bundleno = 227 (0xe3), region = 32  ;;  %s672_s4 = sand.u32 (!%p622_p8), 1, %s548_s13  }
  0x26   : > { %s356_s7 = sshll.u32 (!%p622_p8), %s672_s4, 3  ;;  %s171_s8 = scalar_lea.sflag (!%p622_p8), [#allocation3], %s672_s4 }
  0x27   : > { %s174_s9 = scalar_lea.vmem (!%p622_p8), [#allocation2], %s356_s7 }
  0x2a   : > { %531 = dma.done.wait (%p609_p4), %s171_s8, 128  }
  0x2b   : > { %533 = vsyncadd (%p609_p4), %s171_s8, 4294967168 }
  0x2c   : > { %535 = dma.done.wait (%p41_p1), [#allocation6], 16  }
  0x2d   : > { %537 = vsyncadd (%p41_p1), [#allocation6], 4294967280  ;;  %vm204_vm0 = vcmask 261120   ;;  %v203_v0 = vld [vmem:[%s174_s9] sm:$0xff]  ;;  %s360_s18 = sshll.u32 %s600_s16, 3  ;;  %s202_s21 = scalar_lea.vmem [#allocation7], %s356_s7 }
  0x2e   : > { %v205_v1 = vsel %vm204_vm0, %v203_v0, 0.0  ;;  %v208_v2 = vmul.f32 %v203_v0, %v203_v0  ;;  %v420_v29 = vld [vmem:[#allocation5] ss:$0 sm:$0xff]  ;;  %s264_s11 = scalar_lea.hbm %s730_s3, %s360_s18  ;;  %v421_v32 = vld [vmem:[%s729_s2] ss:$0 sm:$0xff]  ;;  %s266_s16 = sshll.u32 %s202_s21, 4  ;;  %s267_s16 = int_to_ptr.vmem [resolvable:$true] %s266_s16 }
  0x2f   : > { %206 = vadd.xlane.f32.xlu0 %v205_v1  ;;  %s268_s22 = sshll.u32 %s264_s11, 4  ;;  %s254_s24 = scalar_lea.sflag [#allocation4], %s672_s4  ;;  %s269_s22 = int_to_ptr.hbm [resolvable:$true] %s268_s22 }
  0x30   : > { %v209_v3 = vsel %vm204_vm0, %v208_v2, 0.0  ;;  %s500_s25 = sshra.s32 %s269_s22, 4  ;;  %s506_s6 = scalar_lea.hbm %s730_s3, 16  ;;  %s501_s25 = int_to_ptr.hbm [resolvable:$true] %s500_s25 }
  0x31   : > { %s502_s27 = scalar_lea.hbm %s501_s25, 8  ;;  %p507_p9 = scmp.lt.s32.totalorder %s501_s25, %s730_s3 }
  0x32   : > { %p503_p1 = scmp.ne.s32.totalorder %s501_s25, %s502_s27  ;;  %p508_p10 = scmp.lt.s32.totalorder %s506_s6, %s502_s27 }
  0x34   : > { %p504_p4 = pnand %p503_p1, %p645_p3  ;;  %p509_p2 = por %p508_p10, %p507_p9 }
  0x36   : > { %p505_p8 = pneg %p504_p4 }
  0x37   : > { %210 = vadd.xlane.f32.xlu0 %v209_v3 }
  0x38   : > { %p510_p11 = pnand %p509_p2, %p505_p8 }
  0xa2   : > { %v207_v4 = vpop.xlane.xlu0 %206 }
  0xa3   : > { %v212_v5 = vmul.f32 0.03125, %v207_v4 }
  0xa5   : > { %v214_v7 = vmul.f32 %v212_v5, %v212_v5  ;;  %v240_v28 = vsub.f32 %v203_v0, %v212_v5 }
  0xaa   : > { %v211_v6 = vpop.xlane.xlu0 %210 }
  0xab   : > { %v213_v8 = vmul.f32 0.03125, %v211_v6 }
  0xad   : > { %v215_v9 = vsub.f32 %v213_v8, %v214_v7 }
  0xaf   : > { %v216_v10 = vmax.f32 %v215_v9, 0.0 }
  0xb1   : > { %422 = vrsqrt.f32 %v216_v10  ;;  %vm224_vm1 = vcmp.eq.f32.partialorder %v216_v10, inf  ;;  %v227_v18 = vand.u32 2147483648, %v216_v10  ;;  %vm226_vm2 = vcmp.eq.f32.partialorder %v216_v10, 0.0 }
  0xb7   : > { %v423_v11 = vpop.eup %422 }
  0xb8   : > { %v218_v12 = vmul.f32 %v423_v11, %v216_v10 }
  0xba   : > { %v219_v13 = vmul.f32 %v423_v11, %v218_v12 }
  0xbc   : > { %v220_v14 = vmul.f32 0.5, %v219_v13 }
  0xbe   : > { %v221_v15 = vsub.f32 1.5, %v220_v14 }
  0xc0   : > { %v222_v16 = vmul.f32 %v423_v11, %v221_v15 }
  0xc2   : > { %v223_v17 = vmul.f32 %v222_v16, %v216_v10 }
  0xc4   : > { %v225_v19 = vsel %vm224_vm1, %v216_v10, %v223_v17 }
  0xc5   : > { %v228_v20 = vsel %vm226_vm2, %v227_v18, %v225_v19 }
  0xc6   : > { %v229_v21 = vadd.f32 1e-06, %v228_v20 }
  0xc8   : > { %424 = vrsqrt.f32 %v229_v21  ;;  %vm236_vm4 = vweird.f32 %v229_v21 }
  0xce   : > { %v425_v22 = vpop.eup %424 }
  0xcf   : > { %v231_v23 = vmul.f32 %v425_v22, %v229_v21  ;;  %vm237_vm3 = vweird.f32 %v425_v22 }
  0xd0   : > { %vm238_vm5 = vmor %vm236_vm4, %vm237_vm3 }
  0xd1   : > { %v232_v24 = vmul.f32 %v425_v22, %v231_v23 }
  0xd3   : > { %v233_v25 = vmul.f32 0.5, %v232_v24 }
  0xd5   : > { %v234_v26 = vsub.f32 1.5, %v233_v25 }
  0xd7   : > { %v235_v27 = vmul.f32 %v425_v22, %v234_v26 }
  0xd9   : > { %v239_v30 = vsel %vm238_vm5, %v425_v22, %v235_v27 }
  0xda   : > { %v241_v31 = vmul.f32 %v240_v28, %v239_v30 }
  0xdc   : > { %v246_v33 = vmul.f32 %v420_v29, %v241_v31 }
  0xde   : > { %v251_v34 = vadd.f32 %v421_v32, %v246_v33 }
  0xe0   : > { %252 = vst.msk [vmem:[%s202_s21] sm:$0xff] %vm204_vm0, %v251_v34 }
  0xe1   : > { %513 = shalt.err (!%p510_p11)
}
  0xe2   : > { %369 = dma.vmem_to_hbm [thread:$0]  (%p645_p3), %s267_s16, 128, %s269_s22, %s254_s24  }
  0xe3 PF: > { %s280_s4 = sand.u32 1, %s544_s12   ;;  %p736_p12 = scmp.ge.s32.totalorder %s556_s15, 2 }
  0xe4   : > { %s281_s9 = scalar_lea.sflag [#allocation4], %s280_s4 }
  0xe5   : > { %p380_p13 = pnand %p736_p12, %p614_p6 }
  0xe7   : > { %p381_p0 = pneg %p380_p13 }
  0xe9   : > { %539 = dma.done.wait (%p381_p0), %s281_s9, 128  }
  0xea   : > { %541 = vsyncadd (%p381_p0), %s281_s9, 4294967168  ;;  %p17_p5 = scmp.ge.s32.totalorder %s632_s26, 4   ;;  %s737_s12 = smov %s548_s13 }
  0xeb   : > { %s738_s13 = smov %s552_s14  ;;  %s739_s14 = smov %s641_s29 }
  0xec   : > { %s740_s15 = smov %s632_s26  ;;  %19 = sbr.rel (!%p17_p5) target bundleno = 6 (0x6), region = 81 }
  0xf1   :  { %287 = vsyncpa [#allocation3], 1 }
  0xf2   :  { %289 = vsyncpa [#allocation3 + $0x1], 1 }
  0xf3   :  { %290 = vsyncpa [#allocation6], 1 }
  0xf4   :  { %291 = vsyncpa [#allocation4], 1 }
  0xf5   :  { %293 = vsyncpa [#allocation4 + $0x1], 1 }

</bundles_post_ra>
